<compile_context>
chip_gen: v5e
topology: v5e:2x2
jax: 0.10.0
libtpu: 0.0.40
codegen_flags: <defaults>
</compile_context>

<pallas_src>
import jax
import jax.numpy as jnp
from jax.experimental import pallas as pl
from jax.experimental.pallas import tpu as pltpu

H1, H2, H3 = 32, 64, 64  # hidden widths fixed by the PyTorch module


def _round_up(x, m):
    return (x + m - 1) // m * m


def _make_kernel(s_pad, a_pad, row_offs):
    """Kernel over one batch tile, feature-major (batch on the lane axis)."""
    o1, o2, o3, o4 = row_offs  # row offsets of W1..W4 inside the packed slab

    def kernel(x_ref, w_ref, b_ref, out_ref):
        wdt = w_ref.dtype
        x = x_ref[...].astype(wdt)                       # (s_pad, tile_b)

        # layer1 + relu: (H1, s_pad) @ (s_pad, tile_b) -> (H1, tile_b)
        h = jnp.dot(w_ref[o1:o1 + H1, 0:s_pad], x,
                    preferred_element_type=jnp.float32) + b_ref[o1:o1 + H1, :]
        h = jnp.maximum(h, 0.0)
        # layer2 + relu: (H2, H1) @ (H1, tile_b)
        h = jnp.dot(w_ref[o2:o2 + H2, 0:H1], h.astype(wdt),
                    preferred_element_type=jnp.float32) + b_ref[o2:o2 + H2, :]
        h = jnp.maximum(h, 0.0)
        # layer3 + relu: (H3, H2) @ (H2, tile_b)
        h = jnp.dot(w_ref[o3:o3 + H3, 0:H2], h.astype(wdt),
                    preferred_element_type=jnp.float32) + b_ref[o3:o3 + H3, :]
        h = jnp.maximum(h, 0.0)
        # layer4 (no activation): (a_pad, H3) @ (H3, tile_b)
        y = (jnp.dot(w_ref[o4:o4 + a_pad, 0:H3], h.astype(wdt),
                     preferred_element_type=jnp.float32)
             + b_ref[o4:o4 + a_pad, :])
        out_ref[...] = y.astype(out_ref.dtype)

    return kernel


def pack_params(params, state_size, action_size, *, param_dtype=jnp.float32):
    """Pack the 8 parameter arrays into two slabs (fewer DMA descriptors).

    w_slab: (32 + 64 + 64 + round_up(action_size, 8), max(s_pad, 64)).
            Layer i's (fan_out, fan_in) weight sits at an 8/16-aligned row
            offset; unused rows/columns are zero (never contribute).
    b_slab: (rows, 1) float32; bias of layer i in rows [off_i, off_i+fan_out).
    Returns (w_slab, b_slab, row_offsets).
    """
    s_pad = _round_up(state_size, 8)
    a_pad = _round_up(action_size, 8)
    fan_ins = (state_size, H1, H2, H3)
    fan_outs = (H1, H2, H3, action_size)
    row_blocks = (H1, H2, H3, a_pad)               # all multiples of 8 (and 16)
    cols = max(s_pad, H1, H2, H3)
    rows = sum(row_blocks)

    w_slab = jnp.zeros((rows, cols), param_dtype)
    b_slab = jnp.zeros((rows, 1), jnp.float32)
    offs, r = [], 0
    for i, (fi, fo, rb) in enumerate(zip(fan_ins, fan_outs, row_blocks), 1):
        offs.append(r)
        w = jnp.asarray(params[f"w{i}"], jnp.float32)      # (fan_out, fan_in)
        b = jnp.asarray(params[f"b{i}"], jnp.float32).reshape(-1)
        w_slab = w_slab.at[r:r + fo, :fi].set(w.astype(param_dtype))
        b_slab = b_slab.at[r:r + fo, 0].set(b)
        r += rb
    return w_slab, b_slab, tuple(offs)


def qnetwork_forward(state, w_slab, b_slab, row_offs, *, action_size,
                     tile_b=None):
    """state: (B, state_size) f32; slabs from pack_params. Returns (B, action_size)."""
    batch, state_size = state.shape
    s_pad = _round_up(state_size, 8)
    a_pad = _round_up(action_size, 8)

    # --- batch tiling --------------------------------------------------------
    # Lane-dense blocks require tile_b % 128 == 0. Small batches (<=512 rows)
    # run as one grid step (single ~0.35us fixed cost); larger batches split
    # into an even number of <=2048-row tiles that evenly cover the padded
    # batch, so ("parallel",) can shard the grid across both v7x TensorCores
    # while keeping per-step work large on single-TC v5e/v6e.
    b_min = _round_up(batch, 128)
    if tile_b is None:
        if b_min <= 512:
            tile_b = b_min
        else:
            n_tiles = max(2, pl.cdiv(b_min, 2048))
            n_tiles += n_tiles % 2                     # even number of steps
            tile_b = _round_up(pl.cdiv(b_min, n_tiles), 128)
    assert tile_b % 128 == 0, "tile_b must be a multiple of 128"
    b_pad = _round_up(batch, tile_b)

    # Feature-major input (s_pad, b_pad): batch on the lane axis. Zero-padded
    # state rows match the slab's zero weight columns; padded batch columns
    # produce garbage that is sliced off below.
    x_t = jnp.pad(state.astype(jnp.float32).T,
                  ((0, s_pad - state_size), (0, b_pad - batch)))

    flops = 2 * b_pad * (s_pad * H1 + H1 * H2 + H2 * H3 + H3 * a_pad)
    bytes_accessed = (4 * b_pad * (s_pad + a_pad)
                      + int(w_slab.size) * w_slab.dtype.itemsize
                      + int(b_slab.size) * 4)

    out = pl.pallas_call(
        _make_kernel(s_pad, a_pad, row_offs),
        out_shape=jax.ShapeDtypeStruct((a_pad, b_pad), jnp.float32),
        grid=(b_pad // tile_b,),
        in_specs=[
            pl.BlockSpec((s_pad, tile_b), lambda i: (0, i)),   # streamed batch
            pl.BlockSpec(w_slab.shape, lambda i: (0, 0)),      # VMEM-resident
            pl.BlockSpec(b_slab.shape, lambda i: (0, 0)),      # VMEM-resident
        ],
        out_specs=pl.BlockSpec((a_pad, tile_b), lambda i: (0, i)),
        compiler_params=pltpu.CompilerParams(
            dimension_semantics=("parallel",)),  # shards batch tiles across v7x TCs
        cost_estimate=pl.CostEstimate(
            flops=flops, transcendentals=0, bytes_accessed=bytes_accessed),
    )(x_t, w_slab, b_slab)

    # Back to batch-major; drop fan_out/batch padding.
    return out[:action_size, :batch].T


def init_qnetwork_params(key, state_size, action_size):
    """Deterministic init mimicking PyTorch's default Linear init:
    U(-1/sqrt(fan_in), 1/sqrt(fan_in)); weights in (fan_out, fan_in) layout."""
    dims = [(state_size, H1), (H1, H2), (H2, H3), (H3, action_size)]
    params = {}
    for i, (fan_in, fan_out) in enumerate(dims, start=1):
        key, kw, kb = jax.random.split(key, 3)
        bound = 1.0 / jnp.sqrt(jnp.float32(fan_in))
        params[f"w{i}"] = jax.random.uniform(
            kw, (fan_out, fan_in), jnp.float32, minval=-bound, maxval=bound)
        params[f"b{i}"] = jax.random.uniform(
            kb, (fan_out,), jnp.float32, minval=-bound, maxval=bound)
    return params


def qnetwork_reference(state, params):
    """Pure-JAX reference (matches the PyTorch forward)."""
    h = jnp.maximum(state @ params["w1"].T + params["b1"], 0.0)
    h = jnp.maximum(h @ params["w2"].T + params["b2"], 0.0)
    h = jnp.maximum(h @ params["w3"].T + params["b3"], 0.0)
    return h @ params["w4"].T + params["b4"]


if __name__ == "__main__":
    state_size = 8    # LunarLander-v2 observation size
    action_size = 4   # LunarLander-v2 action count

    key = jax.random.PRNGKey(0)
    key_params, key_s1, key_s2 = jax.random.split(key, 3)

    params = init_qnetwork_params(key_params, state_size, action_size)
    w_f32, b_f32, offs = pack_params(params, state_size, action_size)

    # 1) Online-acting shape (batch=2): single 128-lane tile; padded rows and
    #    padded batch columns are sliced off. Exact f32 path vs reference.
    state_small = jax.random.normal(key_s1, (2, state_size), jnp.float32)
    q_small = jax.block_until_ready(
        qnetwork_forward(state_small, w_f32, b_f32, offs,
                         action_size=action_size))
    assert q_small.shape == (2, action_size)
    assert jnp.allclose(q_small, qnetwork_reference(state_small, params),
                        atol=1e-5, rtol=1e-5)

    # 2) Replay-buffer shape (batch=200), forced into 2 grid steps of 128
    #    rows: exercises the pipelined / TC-parallel batch grid + padding.
    state_big = jax.random.normal(key_s2, (200, state_size), jnp.float32)
    q_big = jax.block_until_ready(
        qnetwork_forward(state_big, w_f32, b_f32, offs,
                         action_size=action_size, tile_b=128))
    assert q_big.shape == (200, action_size)
    assert jnp.allclose(q_big, qnetwork_reference(state_big, params),
                        atol=1e-5, rtol=1e-5)

    # 3) bf16 weight slab (MXU-native on v5e/v6e/v7x), f32 accumulation via
    #    preferred_element_type. Numerics differ slightly from the f32
    #    reference, so the tolerance is loosened per the review.
    w_bf16, b_bf16, offs_bf = pack_params(
        params, state_size, action_size, param_dtype=jnp.bfloat16)
    q_bf16 = jax.block_until_ready(
        qnetwork_forward(state_big, w_bf16, b_bf16, offs_bf,
                         action_size=action_size))
    assert q_bf16.shape == (200, action_size)
    assert jnp.allclose(q_bf16, qnetwork_reference(state_big, params),
                        atol=5e-2, rtol=5e-2)

    print("KERNEL_OK")
</pallas_src>

<mosaic_0001>
module attributes {stable_mosaic.version = 11 : i64} {
  func.func @kernel(%arg0: i32, %arg1: memref<8x128xf32, #tpu.memory_space<vmem>>, %arg2: memref<168x64xf32, #tpu.memory_space<vmem>>, %arg3: memref<168x1xf32, #tpu.memory_space<vmem>>, %arg4: memref<8x128xf32, #tpu.memory_space<vmem>>) attributes {dimension_semantics = [#tpu.dimension_semantics<parallel>], iteration_bounds = array<i64: 1>, scalar_prefetch = 0 : i64, scratch_operands = 0 : i64, tpu.core_type = #tpu.core_type<tc>, window_params = [{transform_indices = @transform_0, window_bounds = array<i64: 8, 128>}, {pipeline_mode = #tpu.pipeline_mode<synchronous>, transform_indices = @transform_1, window_bounds = array<i64: 168, 64>}, {pipeline_mode = #tpu.pipeline_mode<synchronous>, transform_indices = @transform_2, window_bounds = array<i64: 168, 1>}, {transform_indices = @transform_3, window_bounds = array<i64: 8, 128>}]} {
    %c0 = arith.constant 0 : index
    %c0_0 = arith.constant 0 : index
    %0 = vector.load %arg1[%c0, %c0_0] : memref<8x128xf32, #tpu.memory_space<vmem>>, vector<8x128xf32>
    %c0_1 = arith.constant 0 : index
    %c0_2 = arith.constant 0 : index
    %1 = vector.load %arg2[%c0_1, %c0_2] : memref<168x64xf32, #tpu.memory_space<vmem>>, vector<32x8xf32>
    %cst = arith.constant dense<0.000000e+00> : vector<32x128xf32>
    %2 = tpu.matmul %1, %0, %cst {dimension_numbers = #tpu.dot_dimension_numbers<[1], [0], [0], [1], [0, 0, 1, 1], [], []>} : vector<32x8xf32>, vector<8x128xf32>, vector<32x128xf32> -> vector<32x128xf32>
    %c0_3 = arith.constant 0 : index
    %c0_4 = arith.constant 0 : index
    %3 = vector.load %arg3[%c0_3, %c0_4] : memref<168x1xf32, #tpu.memory_space<vmem>>, vector<32x1xf32>
    %4 = vector.broadcast %3 : vector<32x1xf32> to vector<32x128xf32>
    %5 = arith.addf %2, %4 : vector<32x128xf32>
    %cst_5 = arith.constant 0.000000e+00 : f32
    %6 = vector.broadcast %cst_5 : f32 to vector<32x128xf32>
    %7 = arith.maximumf %5, %6 : vector<32x128xf32>
    %c32 = arith.constant 32 : index
    %c0_6 = arith.constant 0 : index
    %8 = vector.load %arg2[%c32, %c0_6] : memref<168x64xf32, #tpu.memory_space<vmem>>, vector<64x32xf32>
    %cst_7 = arith.constant dense<0.000000e+00> : vector<64x128xf32>
    %9 = tpu.matmul %8, %7, %cst_7 {dimension_numbers = #tpu.dot_dimension_numbers<[1], [0], [0], [1], [0, 0, 1, 1], [], []>} : vector<64x32xf32>, vector<32x128xf32>, vector<64x128xf32> -> vector<64x128xf32>
    %c32_8 = arith.constant 32 : index
    %c0_9 = arith.constant 0 : index
    %10 = vector.load %arg3[%c32_8, %c0_9] : memref<168x1xf32, #tpu.memory_space<vmem>>, vector<64x1xf32>
    %11 = vector.broadcast %10 : vector<64x1xf32> to vector<64x128xf32>
    %12 = arith.addf %9, %11 : vector<64x128xf32>
    %cst_10 = arith.constant 0.000000e+00 : f32
    %13 = vector.broadcast %cst_10 : f32 to vector<64x128xf32>
    %14 = arith.maximumf %12, %13 : vector<64x128xf32>
    %c96 = arith.constant 96 : index
    %c0_11 = arith.constant 0 : index
    %15 = vector.load %arg2[%c96, %c0_11] : memref<168x64xf32, #tpu.memory_space<vmem>>, vector<64x64xf32>
    %cst_12 = arith.constant dense<0.000000e+00> : vector<64x128xf32>
    %16 = tpu.matmul %15, %14, %cst_12 {dimension_numbers = #tpu.dot_dimension_numbers<[1], [0], [0], [1], [0, 0, 1, 1], [], []>} : vector<64x64xf32>, vector<64x128xf32>, vector<64x128xf32> -> vector<64x128xf32>
    %c96_13 = arith.constant 96 : index
    %c0_14 = arith.constant 0 : index
    %17 = vector.load %arg3[%c96_13, %c0_14] : memref<168x1xf32, #tpu.memory_space<vmem>>, vector<64x1xf32>
    %18 = vector.broadcast %17 : vector<64x1xf32> to vector<64x128xf32>
    %19 = arith.addf %16, %18 : vector<64x128xf32>
    %cst_15 = arith.constant 0.000000e+00 : f32
    %20 = vector.broadcast %cst_15 : f32 to vector<64x128xf32>
    %21 = arith.maximumf %19, %20 : vector<64x128xf32>
    %c160 = arith.constant 160 : index
    %c0_16 = arith.constant 0 : index
    %22 = vector.load %arg2[%c160, %c0_16] : memref<168x64xf32, #tpu.memory_space<vmem>>, vector<8x64xf32>
    %cst_17 = arith.constant dense<0.000000e+00> : vector<8x128xf32>
    %23 = tpu.matmul %22, %21, %cst_17 {dimension_numbers = #tpu.dot_dimension_numbers<[1], [0], [0], [1], [0, 0, 1, 1], [], []>} : vector<8x64xf32>, vector<64x128xf32>, vector<8x128xf32> -> vector<8x128xf32>
    %c160_18 = arith.constant 160 : index
    %c0_19 = arith.constant 0 : index
    %24 = vector.load %arg3[%c160_18, %c0_19] : memref<168x1xf32, #tpu.memory_space<vmem>>, vector<8x1xf32>
    %25 = vector.broadcast %24 : vector<8x1xf32> to vector<8x128xf32>
    %26 = arith.addf %23, %25 : vector<8x128xf32>
    %c0_20 = arith.constant 0 : index
    %c0_21 = arith.constant 0 : index
    %27 = vector.load %arg4[%c0_20, %c0_21] : memref<8x128xf32, #tpu.memory_space<vmem>>, vector<8x128xf32>
    tpu.vector_store %arg4[%c0_20, %c0_21], %26 {strides = array<i32>} : memref<8x128xf32, #tpu.memory_space<vmem>>, vector<8x128xf32>,
    return
  }
  func.func @transform_0(%arg0: i32) -> (i32, i32) {
    %c0_i32 = arith.constant 0 : i32
    %c0_i32_0 = arith.constant 0 : i32
    return %c0_i32, %arg0 : i32, i32
  }
  func.func @transform_1(%arg0: i32) -> (i32, i32) {
    %c0_i32 = arith.constant 0 : i32
    %c0_i32_0 = arith.constant 0 : i32
    %c0_i32_1 = arith.constant 0 : i32
    return %c0_i32, %c0_i32_0 : i32, i32
  }
  func.func @transform_2(%arg0: i32) -> (i32, i32) {
    %c0_i32 = arith.constant 0 : i32
    %c0_i32_0 = arith.constant 0 : i32
    %c0_i32_1 = arith.constant 0 : i32
    return %c0_i32, %c0_i32_0 : i32, i32
  }
  func.func @transform_3(%arg0: i32) -> (i32, i32) {
    %c0_i32 = arith.constant 0 : i32
    %c0_i32_0 = arith.constant 0 : i32
    return %c0_i32, %arg0 : i32, i32
  }
}

</mosaic_0001>

<bundles_post_ra>
// kernel: tpu_custom_call.1
= control target key start
LH: loop header
LB: loop body
LE: loop exit
PB: predicated region body
PF: predicated region fallthrough
CT: control target
= control target key end

     0   :  { %vm44_vm0 = vcmask 64512   ;;  %v461_v3 = vmov 0   ;;  %s636_s0 = inlined_call_operand.vmem [shape: f32[8,128], index: 0, kind: input, shape index: {}]   ;;  %s637_s1 = inlined_call_operand.vmem [shape: f32[168,64], index: 1, kind: input, shape index: {}]   ;;  %s638_s2 = inlined_call_operand.vmem [shape: f32[168,1], index: 2, kind: input, shape index: {}]   ;;  %s639_s3 = inlined_call_operand.hbm [shape: f32[8,128], index: 3, kind: output, shape index: {}]  }
   0x1   :  { %v15_v0 = vld [vmem:[%s636_s0] sm:$0xff]  ;;  %v23_v1 = vld [vmem:[%s638_s2 + $0x18] sm:$0xff]  ;;  %v21_v2 = vld [vmem:[%s638_s2 + $0x8] sm:$0xff]  ;;  %433 = vset.pattern.permute.xlu1 %v461_v3  ;;  %432 = vset.pattern.permute.xlu0 %v461_v3 }
   0x2   :  { %v16_v4 = vld [vmem:[%s637_s1] sm:$0xff]  ;;  %72 = vmatpush.msra.mxu0 %v15_v0  ;;  %41 = vperm.xlu0 %432, %v23_v1  }
   0x3   :  { %31 = vperm.xlu1 %433, %v21_v2   ;;  %397 = vmatmul.msk.f32.vlgmr.msra.gmra.mxu0 %vm44_vm0, %v16_v4 }
   0x4   :  { %434 = vset.pattern.permute.xlu2 %v461_v3 }
   0x5   :  { %8 = vsyncpa [#allocation3], 0  ;;  %v22_v5 = vld [vmem:[%s638_s2 + $0x10] sm:$0xff]  ;;  %v20_v6 = vld [vmem:[%s638_s2] sm:$0xff]  ;;  %vm146_vm1 = vcmask 261120   ;;  %vm276_vm2 = vcmask 523264  }
   0x6   :  { %v17_v7 = vld [vmem:[%s637_s1 + $0x8] sm:$0xff]  ;;  %v102_v9 = vld [vmem:[%s638_s2 + $0x40] sm:$0xff]  ;;  %v18_v10 = vld [vmem:[%s637_s1 + $0x10] sm:$0xff]  ;;  %s462_s13 = smov [#allocation2]   ;;  %s388_s17 = sshll.u32 %s639_s3, 4  ;;  %s389_s17 = int_to_ptr.hbm [resolvable:$true] %s388_s17 }
   0x7   :  { %v103_v8 = vld [vmem:[%s638_s2 + $0x48] sm:$0xff]  ;;  %v100_v11 = vld [vmem:[%s638_s2 + $0x30] sm:$0xff]  ;;  %v19_v13 = vld [vmem:[%s637_s1 + $0x18] sm:$0xff]  ;;  %s386_s14 = sshll.u32 %s462_s13, 4  ;;  %s387_s14 = int_to_ptr.vmem [resolvable:$true] %s386_s14 }
   0x8   :  { %v99_v12 = vld [vmem:[%s638_s2 + $0x28] sm:$0xff]  ;;  %v235_v14 = vld [vmem:[%s638_s2 + $0x98] sm:$0xff]  ;;  %v234_v15 = vld [vmem:[%s638_s2 + $0x90] sm:$0xff] }
   0x9   :  { %v232_v16 = vld [vmem:[%s638_s2 + $0x80] sm:$0xff]  ;;  %v231_v17 = vld [vmem:[%s638_s2 + $0x78] sm:$0xff]  ;;  %v229_v18 = vld [vmem:[%s638_s2 + $0x68] sm:$0xff] }
   0xa   :  { %36 = vperm.xlu0 %432, %v22_v5   ;;  %v228_v19 = vld [vmem:[%s638_s2 + $0x60] sm:$0xff]  ;;  %v105_v25 = vld [vmem:[%s638_s2 + $0x58] sm:$0xff]  ;;  %v104_v33 = vld [vmem:[%s638_s2 + $0x50] sm:$0xff] }
   0xb   :  { %26 = vperm.xlu1 %433, %v20_v6   ;;  %398 = vmatmul.msk.f32.gmra.mxu0 %vm44_vm0, %v17_v7  ;;  %v90_v38 = vld [vmem:[%s637_s1 + $0x20] sm:$0xff]  ;;  %v92_v39 = vld [vmem:[%s637_s1 + $0x30] sm:$0xff]  ;;  %v101_v40 = vld [vmem:[%s638_s2 + $0x38] sm:$0xff] }
   0xc   :  { %143 = vperm.xlu2 %434, %v105_v25   ;;  %v91_v41 = vld [vmem:[%s637_s1 + $0x28] sm:$0xff]  ;;  %v93_v42 = vld [vmem:[%s637_s1 + $0x38] sm:$0xff]  ;;  %v98_v43 = vld [vmem:[%s638_s2 + $0x20] sm:$0xff] }
   0xd   :  { %v94_v44 = vld [vmem:[%s637_s1 + $0x40] sm:$0xff]  ;;  %v233_v45 = vld [vmem:[%s638_s2 + $0x88] sm:$0xff]  ;;  %v230_v47 = vld [vmem:[%s638_s2 + $0x70] sm:$0xff] }
   0xe   :  { %v95_v46 = vld [vmem:[%s637_s1 + $0x48] sm:$0xff]  ;;  %v96_v48 = vld [vmem:[%s637_s1 + $0x50] sm:$0xff]  ;;  %v351_v49 = vld [vmem:[%s638_s2 + $0xa0] sm:$0xff] }
   0xf   :  { %v97_v50 = vld [vmem:[%s637_s1 + $0x58] sm:$0xff] }
  0x10   :  { %v223_v25 = vld [vmem:[%s637_s1 + $0x78] sm:$0xff] }
  0x12   :  { %133 = vperm.xlu0 %432, %v103_v8  }
  0x13   :  { %128 = vperm.xlu1 %433, %v102_v9   ;;  %399 = vmatmul.msk.f32.gmra.mxu0 %vm44_vm0, %v18_v10 }
  0x14   :  { %138 = vperm.xlu2 %434, %v104_v33  }
  0x1a   :  { %118 = vperm.xlu0 %432, %v100_v11  }
  0x1b   :  { %113 = vperm.xlu1 %433, %v99_v12   ;;  %400 = vmatmul.msk.f32.gmra.mxu0 %vm44_vm0, %v19_v13 }
  0x1c   :  { %123 = vperm.xlu2 %434, %v101_v40  }
  0x22   :  { %273 = vperm.xlu0 %432, %v235_v14  }
  0x23   :  { %268 = vperm.xlu1 %433, %v234_v15  }
  0x24   :  { %108 = vperm.xlu2 %434, %v98_v43  }
  0x2a   :  { %258 = vperm.xlu0 %432, %v232_v16  }
  0x2b   :  { %253 = vperm.xlu1 %433, %v231_v17  }
  0x2c   :  { %263 = vperm.xlu2 %434, %v233_v45  }
  0x32   :  { %243 = vperm.xlu0 %432, %v229_v18  }
  0x33   :  { %238 = vperm.xlu1 %433, %v228_v19   ;;  %v220_v19 = vld [vmem:[%s637_s1 + $0x60] sm:$0xff] }
  0x34   :  { %248 = vperm.xlu2 %434, %v230_v47  }
  0x3c   :  { %354 = vperm.xlu2 %434, %v351_v49  }
  0x66   :  { %v144_v54 = vpop.permute.xlu2 %143 }
  0x6e   :  { %v139_v56 = vpop.permute.xlu2 %138 }
  0x74   :  { %v42_v22 = vpop.permute.xlu0 %41 }
  0x75   :  { %v32_v24 = vpop.permute.xlu1 %31 }
  0x76   :  { %v124_v0 = vpop.permute.xlu2 %123 }
  0x7c   :  { %v37_v26 = vpop.permute.xlu0 %36 }
  0x7d   :  { %v27_v32 = vpop.permute.xlu1 %26 }
  0x7e   :  { %v109_v14 = vpop.permute.xlu2 %108 }
  0x80   :  { %v74_v20 = vpop.f32.mrf.mxu0 }
  0x81   :  { %v75_v34 = vadd.f32 %v74_v20, %v27_v32  ;;  %v225_v20 = vld [vmem:[%s637_s1 + $0x88] sm:$0xff] }
  0x83   :  { %v86_v37 = vmax.f32 %v75_v34, 0.0 }
  0x84   :  { %v134_v58 = vpop.permute.xlu0 %133 }
  0x85   :  { %v129_v60 = vpop.permute.xlu1 %128 }
  0x88   :  { %v77_v21 = vpop.f32.mrf.mxu0 }
  0x89   :  { %v78_v30 = vadd.f32 %v77_v21, %v32_v24  ;;  %v221_v21 = vld [vmem:[%s637_s1 + $0x68] sm:$0xff]  ;;  %v227_v24 = vld [vmem:[%s637_s1 + $0x98] sm:$0xff] }
  0x8b   :  { %v87_v36 = vmax.f32 %v78_v30, 0.0 }
  0x8c   :  { %v119_v7 = vpop.permute.xlu0 %118 }
  0x8d   :  { %v114_v11 = vpop.permute.xlu1 %113 }
  0x90   :  { %v80_v23 = vpop.f32.mrf.mxu0 }
  0x91   :  { %v81_v28 = vadd.f32 %v80_v23, %v37_v26  ;;  %v222_v23 = vld [vmem:[%s637_s1 + $0x70] sm:$0xff]  ;;  %v224_v26 = vld [vmem:[%s637_s1 + $0x80] sm:$0xff] }
  0x93   :  { %v88_v35 = vmax.f32 %v81_v28, 0.0 }
  0x95   :  { %v269_v32 = vpop.permute.xlu1 %268 }
  0x98   :  { %v83_v27 = vpop.f32.mrf.mxu0 }
  0x99   :  { %v84_v29 = vadd.f32 %v83_v27, %v42_v22  ;;  %v226_v22 = vld [vmem:[%s637_s1 + $0x90] sm:$0xff] }
  0x9b   :  { %v89_v31 = vmax.f32 %v84_v29, 0.0 }
  0x9d   :  { %183 = vmatpush.msrb.mxu0 %v89_v31  ;;  %418 = vmatpush.msra.mxu1 %v89_v31  ;;  %v274_v31 = vpop.permute.xlu0 %273 }
  0x9f   :  { %184 = vmatpush.msrb.mxu0 %v88_v35  ;;  %419 = vmatpush.msra.mxu1 %v88_v35 }
  0xa1   :  { %185 = vmatpush.msrb.mxu0 %v87_v36  ;;  %420 = vmatpush.msra.mxu1 %v87_v36 }
  0xa3   :  { %186 = vmatpush.msrb.mxu0 %v86_v37  ;;  %421 = vmatpush.msra.mxu1 %v86_v37  ;;  %v264_v37 = vpop.permute.xlu2 %263 }
  0xa4   :  { %401 = vmatmul.msk.f32.vlgmr.msrb.gmra.mxu0 %vm146_vm1, %v90_v38  ;;  %403 = vmatmul.msk.f32.vlgmr.msra.gmra.mxu1 %vm146_vm1, %v92_v39 }
  0xa5   :  { %v259_v43 = vpop.permute.xlu0 %258 }
  0xac   :  { %402 = vmatmul.msk.f32.gmra.mxu0 %vm146_vm1, %v91_v41  ;;  %404 = vmatmul.msk.f32.gmra.mxu1 %vm146_vm1, %v93_v42 }
  0xb4   :  { %405 = vmatmul.msk.f32.gmra.mxu1 %vm146_vm1, %v94_v44  ;;  %v254_v44 = vpop.permute.xlu1 %253 }
  0xbc   :  { %406 = vmatmul.msk.f32.gmra.mxu1 %vm146_vm1, %v95_v46 }
  0xc4   :  { %407 = vmatmul.msk.f32.gmra.mxu1 %vm146_vm1, %v96_v48  ;;  %v249_v48 = vpop.permute.xlu2 %248 }
  0xcc   :  { %408 = vmatmul.msk.f32.gmra.mxu1 %vm146_vm1, %v97_v50 }
 0x121   :  { %v194_v51 = vpop.f32.mrf.mxu1  ;;  %v188_v59 = vpop.f32.mrf.mxu0 }
 0x122   :  { %v195_v9 = vadd.f32 %v194_v51, %v119_v7  ;;  %v189_v16 = vadd.f32 %v188_v59, %v109_v14  ;;  %v244_v51 = vpop.permute.xlu0 %243  ;;  %v350_v59 = vld [vmem:[%s637_s1 + $0xa0] sm:$0xff] }
 0x124   :  { %v214_v15 = vmax.f32 %v195_v9, 0.0  ;;  %v212_v18 = vmax.f32 %v189_v16, 0.0 }
 0x129   :  { %v197_v52 = vpop.f32.mrf.mxu1  ;;  %v191_v8 = vpop.f32.mrf.mxu0 }
 0x12a   :  { %v198_v5 = vadd.f32 %v197_v52, %v124_v0  ;;  %v192_v12 = vadd.f32 %v191_v8, %v114_v11 }
 0x12c   :  { %v215_v13 = vmax.f32 %v198_v5, 0.0  ;;  %v213_v17 = vmax.f32 %v192_v12, 0.0 }
 0x131   :  { %v200_v53 = vpop.f32.mrf.mxu1 }
 0x132   :  { %v201_v3 = vadd.f32 %v200_v53, %v129_v60  ;;  %v355_v60 = vpop.permute.xlu2 %354 }
 0x134   :  { %v216_v10 = vmax.f32 %v201_v3, 0.0 }
 0x139   :  { %v203_v55 = vpop.f32.mrf.mxu1 }
 0x13a   :  { %v204_v1 = vadd.f32 %v203_v55, %v134_v58 }
 0x13c   :  { %v217_v6 = vmax.f32 %v204_v1, 0.0 }
 0x141   :  { %v206_v57 = vpop.f32.mrf.mxu1 }
 0x142   :  { %v207_v62 = vadd.f32 %v206_v57, %v139_v56 }
 0x144   :  { %v218_v4 = vmax.f32 %v207_v62, 0.0 }
 0x149   :  { %v209_v61 = vpop.f32.mrf.mxu1 }
 0x14a   :  { %v210_v63 = vadd.f32 %v209_v61, %v144_v54  ;;  %v239_v54 = vpop.permute.xlu1 %238 }
 0x14c   :  { %v219_v2 = vmax.f32 %v210_v63, 0.0 }
 0x14e   :  { %309 = vmatpush.msra.mxu2 %v219_v2  ;;  %422 = vmatpush.msra.mxu3 %v219_v2 }
 0x150   :  { %310 = vmatpush.msra.mxu2 %v218_v4  ;;  %423 = vmatpush.msra.mxu3 %v218_v4 }
 0x152   :  { %311 = vmatpush.msra.mxu2 %v217_v6  ;;  %424 = vmatpush.msra.mxu3 %v217_v6 }
 0x154   :  { %312 = vmatpush.msra.mxu2 %v216_v10  ;;  %425 = vmatpush.msra.mxu3 %v216_v10 }
 0x156   :  { %313 = vmatpush.msra.mxu2 %v215_v13  ;;  %426 = vmatpush.msra.mxu3 %v215_v13 }
 0x158   :  { %314 = vmatpush.msra.mxu2 %v214_v15  ;;  %427 = vmatpush.msra.mxu3 %v214_v15 }
 0x15a   :  { %315 = vmatpush.msra.mxu2 %v213_v17  ;;  %428 = vmatpush.msra.mxu3 %v213_v17 }
 0x15c   :  { %316 = vmatpush.msra.mxu2 %v212_v18  ;;  %429 = vmatpush.msra.mxu3 %v212_v18 }
 0x15d   :  { %409 = vmatmul.msk.f32.vlgmr.msra.gmra.mxu2 %vm276_vm2, %v220_v19  ;;  %414 = vmatmul.msk.f32.vlgmr.msra.gmra.mxu3 %vm276_vm2, %v225_v20 }
 0x165   :  { %410 = vmatmul.msk.f32.gmra.mxu2 %vm276_vm2, %v221_v21  ;;  %415 = vmatmul.msk.f32.gmra.mxu3 %vm276_vm2, %v226_v22 }
 0x16d   :  { %411 = vmatmul.msk.f32.gmra.mxu2 %vm276_vm2, %v222_v23  ;;  %416 = vmatmul.msk.f32.gmra.mxu3 %vm276_vm2, %v227_v24 }
 0x175   :  { %412 = vmatmul.msk.f32.gmra.mxu2 %vm276_vm2, %v223_v25 }
 0x17d   :  { %413 = vmatmul.msk.f32.gmra.mxu2 %vm276_vm2, %v224_v26 }
 0x1e0   :  { %v318_v27 = vpop.f32.mrf.mxu2  ;;  %v333_v28 = vpop.f32.mrf.mxu3 }
 0x1e1   :  { %v334_v38 = vadd.f32 %v333_v28, %v264_v37  ;;  %v319_v55 = vadd.f32 %v318_v27, %v239_v54 }
 0x1e3   :  { %v347_v41 = vmax.f32 %v334_v38, 0.0  ;;  %v342_v58 = vmax.f32 %v319_v55, 0.0 }
 0x1e8   :  { %v321_v29 = vpop.f32.mrf.mxu2  ;;  %v336_v30 = vpop.f32.mrf.mxu3 }
 0x1e9   :  { %v337_v35 = vadd.f32 %v336_v30, %v269_v32  ;;  %v322_v52 = vadd.f32 %v321_v29, %v244_v51 }
 0x1eb   :  { %v348_v40 = vmax.f32 %v337_v35, 0.0  ;;  %v343_v57 = vmax.f32 %v322_v52, 0.0 }
 0x1f0   :  { %v324_v33 = vpop.f32.mrf.mxu2  ;;  %v339_v34 = vpop.f32.mrf.mxu3 }
 0x1f1   :  { %v340_v36 = vadd.f32 %v339_v34, %v274_v31  ;;  %v325_v49 = vadd.f32 %v324_v33, %v249_v48 }
 0x1f3   :  { %v349_v39 = vmax.f32 %v340_v36, 0.0  ;;  %v344_v56 = vmax.f32 %v325_v49, 0.0 }
 0x1f5   :  { %368 = vmatpush.msrb.mxu3 %v349_v39 }
 0x1f7   :  { %369 = vmatpush.msrb.mxu3 %v348_v40 }
 0x1f8   :  { %v327_v42 = vpop.f32.mrf.mxu2 }
 0x1f9   :  { %370 = vmatpush.msrb.mxu3 %v347_v41  ;;  %v328_v46 = vadd.f32 %v327_v42, %v254_v44 }
 0x1fb   :  { %v345_v53 = vmax.f32 %v328_v46, 0.0 }
 0x200   :  { %v330_v45 = vpop.f32.mrf.mxu2 }
 0x201   :  { %v331_v47 = vadd.f32 %v330_v45, %v259_v43 }
 0x203   :  { %v346_v50 = vmax.f32 %v331_v47, 0.0 }
 0x205   :  { %371 = vmatpush.msrb.mxu3 %v346_v50 }
 0x207   :  { %372 = vmatpush.msrb.mxu3 %v345_v53 }
 0x209   :  { %373 = vmatpush.msrb.mxu3 %v344_v56 }
 0x20b   :  { %374 = vmatpush.msrb.mxu3 %v343_v57 }
 0x20d   :  { %375 = vmatpush.msrb.mxu3 %v342_v58 }
 0x20e   :  { %417 = vmatmul.msk.f32.vlgmr.msrb.gmra.mxu3 %vm276_vm2, %v350_v59 }
 0x291   :  { %v377_v61 = vpop.f32.mrf.mxu3 }
 0x292   :  { %v378_v62 = vadd.f32 %v377_v61, %v355_v60 }
 0x294   :  { %380 = vst [vmem:[#allocation2] sm:$0xff] %v378_v62 }
 0x295   :  { %391 = dma.vmem_to_hbm [thread:$0]  %s387_s14, 128, %s389_s17, [#allocation3]  }
 0x296   :  { %459 = dma.done.wait [#allocation3], 128  }
 0x297   :  { %460 = vsyncadd [#allocation3], 4294967168 }
 0x298   :  { %396 = vsyncpa [#allocation3], 1 }

</bundles_post_ra>
